<compile_context>
chip_gen: v7x
topology: tpu7x:2x2x1
jax: 0.10.0
libtpu: 0.0.40
codegen_flags: <defaults>
</compile_context>

<pallas_src>
import functools

import jax
import jax.numpy as jnp
from jax.experimental import pallas as pl
from jax.experimental.pallas import tpu as pltpu


def _round_up(n, m):
    return ((n + m - 1) // m) * m


@functools.lru_cache(maxsize=1)
def _vmem_budgets():
    """(tile-footprint budget, vmem_limit_bytes) derived from this chip's VMEM.

    v7x  (64 MiB physical): budget ~40 MiB, limit ~56 MiB.
    v5e/v6e (128 MiB):      budget ~88 MiB, limit  96 MiB.
    """
    try:
        cap = int(pltpu.get_tpu_info().vmem_capacity_bytes)
    except Exception:
        cap = 64 * 1024 * 1024  # conservative default: smallest (v7x) VMEM
    budget = max((cap * 3) // 4 - (8 << 20), 16 << 20)
    vmem_limit = min(budget + (16 << 20), 96 << 20, cap - (8 << 20))
    return budget, int(vmem_limit)


def _sem_embed_kernel(x_ref, w1_ref, b1_ref, w2_ref, b2_ref, o_ref):
    # fc1 on the MXU, f32 accumulation; bias + ReLU in f32 (v5e-safe epilogue).
    h = jnp.dot(x_ref[...], w1_ref[...], preferred_element_type=jnp.float32)
    h = jnp.maximum(h + b1_ref[...].astype(jnp.float32), 0.0)
    # fc2: cast post-ReLU intermediate to the weight dtype for the MXU
    # (bf16 on the bf16 path), accumulate in f32.
    o = jnp.dot(h.astype(w2_ref.dtype), w2_ref[...],
                preferred_element_type=jnp.float32)
    o = jnp.maximum(o + b2_ref[...].astype(jnp.float32), 0.0)
    o_ref[...] = o.astype(o_ref.dtype)


def _choose_batch_tile(B, in_size, hidden, out_p, io_bytes, budget_bytes):
    """Largest batch tile (multiple of 16) such that the per-step footprint
    (double-buffered x/out tiles + f32 intermediate + resident weights) fits
    the generation-aware VMEM budget.  Capped at 8192 (f32) / 16384 (bf16) and
    at ~B/2 so the grid has >= 2 steps (keeps both v7x TensorCores busy)."""
    weights = (in_size * hidden + hidden + hidden * out_p + out_p) * io_bytes

    def footprint(tb):
        return (2 * tb * in_size * io_bytes   # x tile, double-buffered
                + 2 * tb * out_p * io_bytes   # out tile, double-buffered
                + tb * hidden * 4             # f32 intermediate h
                + weights)                    # resident weights + biases

    cap = max(16, 32768 // io_bytes)          # 8192 for f32, 16384 for bf16
    half = max(16, _round_up(-(-B // 2), 16))  # keep >= 2 grid steps when possible
    tb = min(cap, _round_up(B, 16), half)
    while tb > 16 and footprint(tb) > budget_bytes:
        tb -= 16
    return max(tb, 16)


@jax.jit
def _xla_forward(x, w1, b1, w2, b2):
    h = jnp.maximum(
        jnp.dot(x, w1, preferred_element_type=jnp.float32)
        + b1.reshape(1, -1).astype(jnp.float32), 0.0)
    o = jnp.maximum(
        jnp.dot(h.astype(w2.dtype), w2, preferred_element_type=jnp.float32)
        + b2.reshape(1, -1).astype(jnp.float32), 0.0)
    return o.astype(x.dtype)


@functools.partial(jax.jit, static_argnames=("tb", "out_p", "vmem_limit"))
def _pallas_forward(x, w1, b1, w2, b2, *, tb, out_p, vmem_limit):
    B, in_size = x.shape
    hidden = w1.shape[1]
    out_size = w2.shape[1]
    out_dtype = x.dtype
    io_bytes = jnp.dtype(x.dtype).itemsize

    # Optional lane padding of the output dimension (off by default: fewer
    # HBM output bytes beats an unmasked vst on this HBM-bound kernel).
    if out_p != out_size:
        w2 = jnp.pad(w2, ((0, 0), (0, out_p - out_size)))
        b2 = jnp.pad(b2.reshape(1, out_size), ((0, 0), (0, out_p - out_size)))
    else:
        b2 = b2.reshape(1, out_p)
    b1 = b1.reshape(1, hidden)

    # Batch padding to a multiple of the tile.
    Bp = _round_up(B, tb)
    if Bp != B:
        x = jnp.pad(x, ((0, Bp - B), (0, 0)))

    grid = (Bp // tb,)

    weight_bytes = (in_size * hidden + hidden + hidden * out_p + out_p) * io_bytes
    cost = pl.CostEstimate(
        flops=2 * Bp * (in_size * hidden + hidden * out_p),
        transcendentals=0,
        bytes_accessed=Bp * (in_size + out_p) * io_bytes + weight_bytes,
    )

    out = pl.pallas_call(
        _sem_embed_kernel,
        out_shape=jax.ShapeDtypeStruct((Bp, out_p), out_dtype),
        grid_spec=pltpu.PrefetchScalarGridSpec(
            num_scalar_prefetch=0,
            grid=grid,
            in_specs=[
                # x tiled over the batch axis (software-pipelined per step).
                pl.BlockSpec((tb, in_size), lambda i: (i, 0)),
                # Weights/biases: constant index_map -> VMEM-resident across
                # steps (no re-DMA).  They total only a few KiB, so shrinking
                # their buffering with pl.Buffered(1) buys nothing measurable.
                pl.BlockSpec((in_size, hidden), lambda i: (0, 0)),
                pl.BlockSpec((1, hidden), lambda i: (0, 0)),
                pl.BlockSpec((hidden, out_p), lambda i: (0, 0)),
                pl.BlockSpec((1, out_p), lambda i: (0, 0)),
            ],
            out_specs=pl.BlockSpec((tb, out_p), lambda i: (i, 0)),
        ),
        compiler_params=pltpu.CompilerParams(
            # Batch steps are independent -> megacore-shardable on v7x.
            dimension_semantics=("parallel",),
            vmem_limit_bytes=vmem_limit,
        ),
        cost_estimate=cost,
    )(x, w1, b1, w2, b2)

    # Emit the slice only if padding actually happened (avoids an extra full
    # HBM read+write of the result in the common unpadded case).
    if Bp != B or out_p != out_size:
        out = out[:B, :out_size]
    return out


def semantic_embedding_forward(x, w1, b1, w2, b2, *, batch_tile=None,
                               pad_output_lanes=False, xla_fallback_rows=1024):
    """x: (B, in), w1: (in, hidden), b1: (hidden,), w2: (hidden, out),
       b2: (out,)  ->  (B, out).

    Weights are stored pre-transposed (in_features, out_features) relative to
    nn.Linear so the kernel does plain row-major matmuls on the MXU.
    """
    B, in_size = x.shape
    assert w1.shape[0] == in_size
    hidden = w1.shape[1]
    assert w2.shape[0] == hidden
    out_size = w2.shape[1]

    # For tiny batches the pad/slice wrapper ops plus the Pallas launch
    # dominate; plain XLA is faster there.
    if batch_tile is None and B < xla_fallback_rows:
        return _xla_forward(x, w1, b1, w2, b2)

    out_p = _round_up(out_size, 128) if pad_output_lanes else out_size
    io_bytes = jnp.dtype(x.dtype).itemsize
    budget, vmem_limit = _vmem_budgets()
    tb = batch_tile if batch_tile is not None else _choose_batch_tile(
        B, in_size, hidden, out_p, io_bytes, budget)
    return _pallas_forward(x, w1, b1, w2, b2,
                           tb=int(tb), out_p=int(out_p), vmem_limit=vmem_limit)


def _reference(x, w1, b1, w2, b2):
    h = jnp.maximum(jnp.dot(x, w1) + b1.reshape(1, -1), 0.0)
    return jnp.maximum(jnp.dot(h, w2) + b2.reshape(1, -1), 0.0)


if __name__ == "__main__":
    # Small, deterministic synthetic config matching the module's forward:
    # fc1: (input_size -> hidden_size), fc2: (hidden_size -> output_size).
    input_size = 32
    hidden_size = 64
    output_size = 16

    key = jax.random.PRNGKey(0)
    kx, k1, k2, k3, k4, kx2 = jax.random.split(key, 6)

    # nn.Linear weights stored pre-transposed as (in, out) for the kernel.
    w1 = jax.random.normal(k1, (input_size, hidden_size), dtype=jnp.float32) * 0.1
    b1 = jax.random.normal(k2, (hidden_size,), dtype=jnp.float32) * 0.1
    w2 = jax.random.normal(k3, (hidden_size, output_size), dtype=jnp.float32) * 0.1
    b2 = jax.random.normal(k4, (output_size,), dtype=jnp.float32) * 0.1

    # ---- small-batch check (B=8), Pallas path forced (fallback disabled) ----
    B = 8
    x = jax.random.normal(kx, (B, input_size), dtype=jnp.float32)
    ref = _reference(x, w1, b1, w2, b2)

    out_f32 = jax.block_until_ready(
        semantic_embedding_forward(x, w1, b1, w2, b2, xla_fallback_rows=0))
    assert out_f32.shape == (B, output_size)
    assert jnp.allclose(out_f32, ref, atol=1e-5, rtol=1e-5)

    # bf16 I/O path (halves HBM bytes; f32 accumulate, relaxed tolerance).
    out_bf16 = jax.block_until_ready(
        semantic_embedding_forward(
            x.astype(jnp.bfloat16),
            w1.astype(jnp.bfloat16), b1.astype(jnp.bfloat16),
            w2.astype(jnp.bfloat16), b2.astype(jnp.bfloat16),
            xla_fallback_rows=0))
    assert out_bf16.shape == (B, output_size)
    assert jnp.allclose(out_bf16.astype(jnp.float32), ref, atol=2e-2, rtol=2e-2)

    # XLA fallback path for tiny batches (default behaviour).
    out_small = jax.block_until_ready(semantic_embedding_forward(x, w1, b1, w2, b2))
    assert jnp.allclose(out_small, ref, atol=1e-5, rtol=1e-5)

    # ---- multi-step-grid check (B=2048 -> tile 1024, grid=2) ----
    B2 = 2048
    x2 = jax.random.normal(kx2, (B2, input_size), dtype=jnp.float32)
    ref2 = _reference(x2, w1, b1, w2, b2)
    out2 = jax.block_until_ready(semantic_embedding_forward(x2, w1, b1, w2, b2))
    assert out2.shape == (B2, output_size)
    assert jnp.allclose(out2, ref2, atol=1e-5, rtol=1e-5)

    # lane-padded output variant still compiles & matches (kept for benchmarking).
    out2_pad = jax.block_until_ready(
        semantic_embedding_forward(x2, w1, b1, w2, b2, pad_output_lanes=True))
    assert jnp.allclose(out2_pad, ref2, atol=1e-5, rtol=1e-5)

    print("KERNEL_OK")
</pallas_src>

<mosaic_0001>
module attributes {stable_mosaic.version = 11 : i64} {
  func.func @_sem_embed_kernel(%arg0: i32, %arg1: memref<16x32xf32, #tpu.memory_space<vmem>>, %arg2: memref<32x64xf32, #tpu.memory_space<vmem>>, %arg3: memref<1x64xf32, #tpu.memory_space<vmem>>, %arg4: memref<64x16xf32, #tpu.memory_space<vmem>>, %arg5: memref<1x16xf32, #tpu.memory_space<vmem>>, %arg6: memref<16x16xf32, #tpu.memory_space<vmem>>) attributes {dimension_semantics = [#tpu.dimension_semantics<parallel>], iteration_bounds = array<i64: 1>, scalar_prefetch = 0 : i64, scratch_operands = 0 : i64, tpu.core_type = #tpu.core_type<tc>, window_params = [{transform_indices = @transform_0, window_bounds = array<i64: 16, 32>}, {pipeline_mode = #tpu.pipeline_mode<synchronous>, transform_indices = @transform_1, window_bounds = array<i64: 32, 64>}, {pipeline_mode = #tpu.pipeline_mode<synchronous>, transform_indices = @transform_2, window_bounds = array<i64: 1, 64>}, {pipeline_mode = #tpu.pipeline_mode<synchronous>, transform_indices = @transform_3, window_bounds = array<i64: 64, 16>}, {pipeline_mode = #tpu.pipeline_mode<synchronous>, transform_indices = @transform_4, window_bounds = array<i64: 1, 16>}, {transform_indices = @transform_5, window_bounds = array<i64: 16, 16>}]} {
    %c0 = arith.constant 0 : index
    %c0_0 = arith.constant 0 : index
    %0 = vector.load %arg1[%c0, %c0_0] : memref<16x32xf32, #tpu.memory_space<vmem>>, vector<16x32xf32>
    %c0_1 = arith.constant 0 : index
    %c0_2 = arith.constant 0 : index
    %1 = vector.load %arg2[%c0_1, %c0_2] : memref<32x64xf32, #tpu.memory_space<vmem>>, vector<32x64xf32>
    %cst = arith.constant dense<0.000000e+00> : vector<16x64xf32>
    %2 = tpu.matmul %0, %1, %cst {dimension_numbers = #tpu.dot_dimension_numbers<[1], [0], [0], [1], [0, 0, 1, 1], [], []>} : vector<16x32xf32>, vector<32x64xf32>, vector<16x64xf32> -> vector<16x64xf32>
    %c0_3 = arith.constant 0 : index
    %c0_4 = arith.constant 0 : index
    %3 = vector.load %arg3[%c0_3, %c0_4] : memref<1x64xf32, #tpu.memory_space<vmem>>, vector<1x64xf32>
    %4 = vector.broadcast %3 : vector<1x64xf32> to vector<16x64xf32>
    %5 = arith.addf %2, %4 : vector<16x64xf32>
    %cst_5 = arith.constant 0.000000e+00 : f32
    %6 = vector.broadcast %cst_5 : f32 to vector<16x64xf32>
    %7 = arith.maximumf %5, %6 : vector<16x64xf32>
    %c0_6 = arith.constant 0 : index
    %c0_7 = arith.constant 0 : index
    %8 = vector.load %arg4[%c0_6, %c0_7] : memref<64x16xf32, #tpu.memory_space<vmem>>, vector<64x16xf32>
    %cst_8 = arith.constant dense<0.000000e+00> : vector<16x16xf32>
    %9 = tpu.matmul %7, %8, %cst_8 {dimension_numbers = #tpu.dot_dimension_numbers<[1], [0], [0], [1], [0, 0, 1, 1], [], []>} : vector<16x64xf32>, vector<64x16xf32>, vector<16x16xf32> -> vector<16x16xf32>
    %c0_9 = arith.constant 0 : index
    %c0_10 = arith.constant 0 : index
    %10 = vector.load %arg5[%c0_9, %c0_10] : memref<1x16xf32, #tpu.memory_space<vmem>>, vector<1x16xf32>
    %11 = vector.broadcast %10 : vector<1x16xf32> to vector<16x16xf32>
    %12 = arith.addf %9, %11 : vector<16x16xf32>
    %cst_11 = arith.constant 0.000000e+00 : f32
    %13 = vector.broadcast %cst_11 : f32 to vector<16x16xf32>
    %14 = arith.maximumf %12, %13 : vector<16x16xf32>
    %c0_12 = arith.constant 0 : index
    %c0_13 = arith.constant 0 : index
    %15 = vector.load %arg6[%c0_12, %c0_13] : memref<16x16xf32, #tpu.memory_space<vmem>>, vector<16x16xf32>
    tpu.vector_store %arg6[%c0_12, %c0_13], %14 {strides = array<i32>} : memref<16x16xf32, #tpu.memory_space<vmem>>, vector<16x16xf32>,
    return
  }
  func.func @transform_0(%arg0: i32) -> (i32, i32) {
    %c0_i32 = arith.constant 0 : i32
    %c0_i32_0 = arith.constant 0 : i32
    return %arg0, %c0_i32 : i32, i32
  }
  func.func @transform_1(%arg0: i32) -> (i32, i32) {
    %c0_i32 = arith.constant 0 : i32
    %c0_i32_0 = arith.constant 0 : i32
    %c0_i32_1 = arith.constant 0 : i32
    return %c0_i32, %c0_i32_0 : i32, i32
  }
  func.func @transform_2(%arg0: i32) -> (i32, i32) {
    %c0_i32 = arith.constant 0 : i32
    %c0_i32_0 = arith.constant 0 : i32
    %c0_i32_1 = arith.constant 0 : i32
    return %c0_i32, %c0_i32_0 : i32, i32
  }
  func.func @transform_3(%arg0: i32) -> (i32, i32) {
    %c0_i32 = arith.constant 0 : i32
    %c0_i32_0 = arith.constant 0 : i32
    %c0_i32_1 = arith.constant 0 : i32
    return %c0_i32, %c0_i32_0 : i32, i32
  }
  func.func @transform_4(%arg0: i32) -> (i32, i32) {
    %c0_i32 = arith.constant 0 : i32
    %c0_i32_0 = arith.constant 0 : i32
    %c0_i32_1 = arith.constant 0 : i32
    return %c0_i32, %c0_i32_0 : i32, i32
  }
  func.func @transform_5(%arg0: i32) -> (i32, i32) {
    %c0_i32 = arith.constant 0 : i32
    %c0_i32_0 = arith.constant 0 : i32
    return %arg0, %c0_i32 : i32, i32
  }
}

</mosaic_0001>

<bundles_post_ra>
// kernel: _pallas_forward.1
= control target key start
LH: loop header
LB: loop body
LE: loop exit
PB: predicated region body
PF: predicated region fallthrough
CT: control target
= control target key end

     0   :  { %vm33_vm0 = vcmask 261120   ;;  %vm132_vm1 = vcmask 523264   ;;  %vm216_vm2 = vcmask 130048   ;;  %s385_s1 = inlined_call_operand.vmem [shape: f32[32,64], index: 1, kind: input, shape index: {}]   ;;  %s386_s0 = inlined_call_operand.vmem [shape: f32[16,32], index: 0, kind: input, shape index: {}]   ;;  %s387_s3 = inlined_call_operand.vmem [shape: f32[64,16], index: 3, kind: input, shape index: {}]   ;;  %s388_s2 = inlined_call_operand.vmem [shape: f32[1,64], index: 2, kind: input, shape index: {}]   ;;  %s389_s4 = inlined_call_operand.vmem [shape: f32[1,16], index: 4, kind: input, shape index: {}]   ;;  %s390_s5 = inlined_call_operand.vmem [shape: f32[16,16], index: 5, kind: output, shape index: {}]  }
   0x1   :  { %v22_v0 = vld [vmem:[%s385_s1] sm:$0xff]  ;;  %v23_v1 = vld [vmem:[%s385_s1 + $0x8] sm:$0xff]  ;;  %v24_v2 = vld [vmem:[%s385_s1 + $0x10] sm:$0xff] }
   0x2   :  { %v275_v3 = vpack.c.bf16 %v23_v1, %v22_v0  ;;  %v25_v4 = vld [vmem:[%s385_s1 + $0x18] sm:$0xff]  ;;  %v20_v5 = vld [vmem:[%s386_s0] sm:$0xff]  ;;  %v118_v8 = vld [vmem:[%s387_s3 + $0x8] sm:$0xff] }
   0x3   :  { %v279_v6 = vpack.c.bf16 %v25_v4, %v24_v2  ;;  %253 = vmatprep.mubr.msk.f32.mxu0 %vm33_vm0, %v20_v5  ;;  %v117_v7 = vld [vmem:[%s387_s3] sm:$0xff]  ;;  %v119_v9 = vld [vmem:[%s387_s3 + $0x10] sm:$0xff]  ;;  %v120_v11 = vld [vmem:[%s387_s3 + $0x18] sm:$0xff] }
   0x4   :  { %276 = vmatprep.subr.bf16.mxu0 %v275_v3  ;;  %v283_v10 = vpack.c.bf16 %v118_v8, %v117_v7  ;;  %v287_v12 = vpack.c.bf16 %v120_v11, %v119_v9  ;;  %v121_v13 = vld [vmem:[%s387_s3 + $0x20] sm:$0xff]  ;;  %v122_v14 = vld [vmem:[%s387_s3 + $0x28] sm:$0xff]  ;;  %v123_v17 = vld [vmem:[%s387_s3 + $0x30] sm:$0xff] }
   0x5   :  { %278 = vmatpush3.bf16.msra.mxu0 %v275_v3  ;;  %v291_v15 = vpack.c.bf16 %v122_v14, %v121_v13  ;;  %v21_v16 = vld [vmem:[%s386_s0 + $0x8] sm:$0xff]  ;;  %v124_v18 = vld [vmem:[%s387_s3 + $0x38] sm:$0xff]  ;;  %v223_v20 = vld [vmem:[%s388_s2] ss:$0 sm:$0xff] }
   0x6   :  { %280 = vmatprep.subr.bf16.mxu0 %v279_v6  ;;  %284 = vmatprep.subr.bf16.mxu1 %v283_v10  ;;  %v295_v19 = vpack.c.bf16 %v124_v18, %v123_v17  ;;  %v226_v27 = vld [vmem:[%s389_s4] ss:$0 sm:$0xff] }
   0x7   :  { %286 = vmatpush3.bf16.msra.mxu1 %v283_v10 }
   0x8   :  { %288 = vmatprep.subr.bf16.mxu1 %v287_v12 }
   0x9   :  { %282 = vmatpush3.bf16.msra.mxu0 %v279_v6 }
   0xb   :  { %290 = vmatpush3.bf16.msra.mxu1 %v287_v12 }
   0xc   :  { %254 = vmatmul.mubr.msk.f32.vlgmr.msra.gmra.mrb[0].mxu0 %vm33_vm0, %v21_v16  ;;  %292 = vmatprep.subr.bf16.mxu1 %v291_v15 }
   0xf   :  { %294 = vmatpush3.bf16.msra.mxu1 %v291_v15 }
  0x10   :  { %296 = vmatprep.subr.bf16.mxu1 %v295_v19 }
  0x13   :  { %298 = vmatpush3.bf16.msra.mxu1 %v295_v19 }
  0xdf   :  { %v255_v21 = vpop.f32.mrb[0].mxu0 }
  0xe0   :  { %v112_v22 = vadd.f32 %v255_v21, %v223_v20  ;;  %v106_v23 = vpop.f32.mrb[1].mxu0 }
  0xe1   :  { %v107_v24 = vadd.f32 %v223_v20, %v106_v23 }
  0xe2   :  { %v116_v26 = vmax.f32 %v112_v22, 0.0 }
  0xe3   :  { %v115_v25 = vmax.f32 %v107_v24, 0.0 }
  0xe5   :  { %272 = vmatprep.mubr.msk.f32.mxu1 %vm132_vm1, %v115_v25 }
  0xe6   :  { %273 = vmatmul.mubr.msk.f32.vlgmr.msra.gmra.mrb[0].mxu1 %vm132_vm1, %v116_v26 }
 0x1b9   :  { %v274_v28 = vpop.f32.mrb[0].mxu1 }
 0x1ba   :  { %v211_v29 = vadd.f32 %v274_v28, %v226_v27  ;;  %v205_v30 = vpop.f32.mrb[1].mxu1 }
 0x1bb   :  { %v206_v31 = vadd.f32 %v226_v27, %v205_v30 }
 0x1bc   :  { %v215_v32 = vmax.f32 %v211_v29, 0.0 }
 0x1bd   :  { %v214_v33 = vmax.f32 %v206_v31, 0.0 }
 0x1be   :  { %218 = vst.msk [vmem:[%s390_s5 + $0x8] sm:$0xff] %vm216_vm2, %v215_v32 }
 0x1bf   :  { %217 = vst.msk [vmem:[%s390_s5] sm:$0xff] %vm216_vm2, %v214_v33 }

</bundles_post_ra>
